<compile_context>
chip_gen: v5e
topology: v5e:2x2
jax: 0.10.0
libtpu: 0.0.40
codegen_flags: <defaults>
</compile_context>

<pallas_src>
import functools

import numpy as np

import jax
import jax.numpy as jnp
from jax.experimental import pallas as pl
from jax.experimental.pallas import tpu as pltpu

EPS = 1e-5


@functools.lru_cache(maxsize=1)
def _pltpu_roll_matches_jnp() -> bool:
    """One-time probe of pltpu.roll's rotation direction (robust across Mosaic
    versions). Returns True iff pltpu.roll(x, s, a) == jnp.roll(x, s, a)."""
    def k(x_ref, o_ref):
        o_ref[...] = pltpu.roll(x_ref[...], 1, 0)

    x = jnp.tile(jnp.arange(8, dtype=jnp.float32)[:, None], (1, 128))
    y = pl.pallas_call(k, out_shape=jax.ShapeDtypeStruct((8, 128), jnp.float32))(x)
    return bool(jnp.array_equal(y, jnp.roll(x, 1, axis=0)))


def _double_conv_kernel(a_ref, w1_ref, g1_ref, b1_ref, w2_ref, g2_ref, b2_ref,
                        fold_ref, o_ref, *, H, W, up_shift, dn_shift):
    """Fused (conv3x3 + BN(train) + ReLU) x 2 on lane-packed activations.

    a_ref    : (N*H, W*Cin)       input rows, channels packed into the lane axis
    w*_ref   : (3, W*Cin_k, W*C)  banded per-kernel-row weight matrices (W zero padding
                                  folded into the band structure)
    g*,b*    : (1, W*C)           BN gamma / beta tiled across the W lane groups
    fold_ref : (W*C, W*C)         0/1 matrix folding the W lane groups per channel
    o_ref    : (N*H, W*C)         lane-dense output rows
    """
    f32 = jnp.float32
    NH = a_ref.shape[0]
    inv_count = 1.0 / float(NH * W)                       # 1 / (N*H*W)
    fold = fold_ref[...]

    # Per-row border masks (NH, 1): zero rows whose H-neighbour falls outside the image
    # (realizes the conv zero padding along H after the circular roll).  O(NH) VPU work,
    # negligible (the quadratic cost removed per review was the NHxNH shift matrices).
    row = jax.lax.broadcasted_iota(jnp.int32, (NH, 1), 0)
    not_top = ((row % H) != 0).astype(f32)                # row r-1 is inside the image
    not_bot = ((row % H) != (H - 1)).astype(f32)          # row r+1 is inside the image

    def conv3x3(a, w_ref):
        # One MXU matmul per kernel row ky.  The H shift is an XLU sublane roll plus a
        # border mask; the W zero padding already lives in the banded weight matrices.
        a_up = not_top * pltpu.roll(a, up_shift, 0)       # a_up[r] = a[r-1]
        a_dn = not_bot * pltpu.roll(a, dn_shift, 0)       # a_dn[r] = a[r+1]
        return (jnp.dot(a_up, w_ref[0], preferred_element_type=f32)
                + jnp.dot(a,    w_ref[1], preferred_element_type=f32)
                + jnp.dot(a_dn, w_ref[2], preferred_element_type=f32))

    def bn_relu(y, gamma, beta):
        # Reduce rows FIRST (cheap XLU reduction), then fold the W lane groups per
        # channel with two tiny (1,WC)x(WC,WC) matmuls (fold is linear, order is free).
        ch_sum = jnp.dot(jnp.sum(y, axis=0, keepdims=True), fold,
                         preferred_element_type=f32)       # (1, WC) per-channel sum
        ch_sqs = jnp.dot(jnp.sum(y * y, axis=0, keepdims=True), fold,
                         preferred_element_type=f32)       # (1, WC) per-channel sum sq
        mean = ch_sum * inv_count
        var = ch_sqs * inv_count - mean * mean             # biased variance (train BN)
        scale = gamma * jax.lax.rsqrt(var + EPS)
        shift = beta - mean * scale
        return jnp.maximum(y * scale + shift, 0.0)

    h1 = bn_relu(conv3x3(a_ref[...], w1_ref), g1_ref[...], b1_ref[...])
    o_ref[...] = bn_relu(conv3x3(h1, w2_ref), g2_ref[...], b2_ref[...])


def _expand_conv_weight(w_hwio, W):
    """(3, 3, Cin, Cout) HWIO -> (3, W*Cin, W*Cout) banded matrices.

    big[ky, u*Cin+ci, w*Cout+co] = w[ky, u-w+1, ci, co] for |u - w| <= 1, else 0,
    i.e. the zero padding along W is folded directly into the weight matrix.
    """
    KH, KW, Cin, Cout = w_hwio.shape
    sel = np.zeros((KW, W, W), np.float32)
    for kx in range(KW):
        for wo in range(W):
            u = wo + kx - 1
            if 0 <= u < W:
                sel[kx, u, wo] = 1.0
    big = jnp.einsum("xuw,yxio->yuiwo", jnp.asarray(sel), w_hwio)  # (KH, W, Cin, W, Cout)
    return big.reshape(KH, W * Cin, W * Cout)


def init_double_conv_params(key, in_ch, out_ch):
    """Deterministic parameter init mimicking PyTorch defaults (shapes only)."""
    k1, k2, k3, k4 = jax.random.split(key, 4)
    bound1 = 1.0 / jnp.sqrt(in_ch * 9)
    bound2 = 1.0 / jnp.sqrt(out_ch * 9)
    return {
        # conv1: PyTorch OIHW -> stored as HWIO for the kernel
        "w1": jax.random.uniform(k1, (3, 3, in_ch, out_ch), jnp.float32, -bound1, bound1),
        "b1": jax.random.uniform(k2, (out_ch,), jnp.float32, -bound1, bound1),
        "g1": jnp.ones((out_ch,), jnp.float32),      # BN weight default
        "beta1": jnp.zeros((out_ch,), jnp.float32),  # BN bias default
        # conv2
        "w2": jax.random.uniform(k3, (3, 3, out_ch, out_ch), jnp.float32, -bound2, bound2),
        "b2": jax.random.uniform(k4, (out_ch,), jnp.float32, -bound2, bound2),
        "g2": jnp.ones((out_ch,), jnp.float32),
        "beta2": jnp.zeros((out_ch,), jnp.float32),
    }


def prepare_double_conv_params(params, W):
    """One-time, per-spatial-width preparation, kept OUT of the per-step jit so the
    weight-expansion einsum and fold matrix are not re-materialized every forward."""
    C = params["w1"].shape[3]
    WC = W * C
    lane = np.arange(WC)
    fold = jnp.asarray((lane[:, None] % C) == (lane[None, :] % C), jnp.float32)
    # NOTE: conv biases params["b1"]/["b2"] are intentionally not used by the kernel —
    # a bias added immediately before training-mode BatchNorm is cancelled by the mean
    # subtraction.  (Reinstate them if eval-mode BN with running stats is ever added.)
    return {
        "w1": _expand_conv_weight(params["w1"], W),        # (3, W*Cin, W*C)
        "w2": _expand_conv_weight(params["w2"], W),        # (3, W*C,  W*C)
        "g1": jnp.tile(params["g1"], W).reshape(1, WC),
        "beta1": jnp.tile(params["beta1"], W).reshape(1, WC),
        "g2": jnp.tile(params["g2"], W).reshape(1, WC),
        "beta2": jnp.tile(params["beta2"], W).reshape(1, WC),
        "fold": fold,                                      # (W*C, W*C)
    }


def double_conv_forward(x_nchw, prep):
    """Forward pass of `double_conv`.  Input/output are NCHW like PyTorch."""
    return _double_conv_forward_jit(x_nchw, prep, _pltpu_roll_matches_jnp())


@functools.partial(jax.jit, static_argnums=(2,))
def _double_conv_forward_jit(x_nchw, prep, roll_is_jnp):
    N, Cin, H, W = x_nchw.shape
    WC = prep["g1"].shape[1]
    C = WC // W
    NH = N * H

    # NCHW -> lane-packed rows (N*H, W*Cin); channels live on the lane axis.
    a = jnp.transpose(x_nchw, (0, 2, 3, 1)).reshape(NH, W * Cin)

    # Static roll amounts producing a[r-1] / a[r+1] under the probed rotate direction.
    up_shift = 1 if roll_is_jnp else NH - 1
    dn_shift = NH - 1 if roll_is_jnp else 1

    # Small fixed shapes -> a single grid step; all operands plus both activations fit
    # VMEM with large headroom even on v7x (64 MiB).
    out = pl.pallas_call(
        functools.partial(_double_conv_kernel, H=H, W=W,
                          up_shift=up_shift, dn_shift=dn_shift),
        out_shape=jax.ShapeDtypeStruct((NH, WC), jnp.float32),
        grid=(1,),
        in_specs=[
            pl.BlockSpec((NH, W * Cin), lambda i: (0, 0)),
            pl.BlockSpec((3, W * Cin, WC), lambda i: (0, 0, 0)),
            pl.BlockSpec((1, WC), lambda i: (0, 0)),
            pl.BlockSpec((1, WC), lambda i: (0, 0)),
            pl.BlockSpec((3, WC, WC), lambda i: (0, 0, 0)),
            pl.BlockSpec((1, WC), lambda i: (0, 0)),
            pl.BlockSpec((1, WC), lambda i: (0, 0)),
            pl.BlockSpec((WC, WC), lambda i: (0, 0)),
        ],
        out_specs=pl.BlockSpec((NH, WC), lambda i: (0, 0)),
        compiler_params=pltpu.CompilerParams(dimension_semantics=("arbitrary",)),
    )(a, prep["w1"], prep["g1"], prep["beta1"],
      prep["w2"], prep["g2"], prep["beta2"], prep["fold"])

    # (N*H, W*C) lane-packed -> NCHW like PyTorch
    return jnp.transpose(out.reshape(N, H, W, C), (0, 3, 1, 2))


def _reference_forward(x_nchw, params):
    """Pure-JAX reference (lax.conv) for a correctness sanity check."""
    def block(x, w_hwio, b, g, beta):
        w_oihw = jnp.transpose(w_hwio, (3, 2, 0, 1))
        y = jax.lax.conv_general_dilated(
            x, w_oihw, window_strides=(1, 1), padding=((1, 1), (1, 1)),
            dimension_numbers=("NCHW", "OIHW", "NCHW"),
            precision=jax.lax.Precision.HIGHEST)
        y = y + b[None, :, None, None]
        mean = jnp.mean(y, axis=(0, 2, 3), keepdims=True)
        var = jnp.mean((y - mean) ** 2, axis=(0, 2, 3), keepdims=True)
        y = (y - mean) * jax.lax.rsqrt(var + EPS)
        y = y * g[None, :, None, None] + beta[None, :, None, None]
        return jnp.maximum(y, 0.0)

    x = block(x_nchw, params["w1"], params["b1"], params["g1"], params["beta1"])
    x = block(x, params["w2"], params["b2"], params["g2"], params["beta2"])
    return x


if __name__ == "__main__":
    key = jax.random.PRNGKey(0)
    kx, kp = jax.random.split(key)

    in_ch, out_ch = 4, 8
    x = jax.random.normal(kx, (2, in_ch, 16, 16), jnp.float32)   # NCHW like PyTorch
    params = init_double_conv_params(kp, in_ch, out_ch)
    prep = prepare_double_conv_params(params, W=x.shape[-1])     # once, outside jit

    out = double_conv_forward(x, prep)
    out = jax.block_until_ready(out)
    assert out.shape == (2, out_ch, 16, 16), out.shape

    ref = _reference_forward(x, params)
    if not jnp.allclose(out, ref, atol=1e-3, rtol=1e-3):
        raise AssertionError("Pallas double_conv does not match JAX reference")

    print("KERNEL_OK")
</pallas_src>

<mosaic_0001>
module attributes {stable_mosaic.version = 11 : i64} {
  func.func @k(%arg0: memref<8x128xf32, #tpu.memory_space<vmem>>, %arg1: memref<8x128xf32, #tpu.memory_space<vmem>>) attributes {dimension_semantics = [], scalar_prefetch = 0 : i64, scratch_operands = 0 : i64, tpu.core_type = #tpu.core_type<tc>} {
    %c0 = arith.constant 0 : index
    %c0_0 = arith.constant 0 : index
    %0 = vector.load %arg0[%c0, %c0_0] : memref<8x128xf32, #tpu.memory_space<vmem>>, vector<8x128xf32>
    %c1_i32 = arith.constant 1 : i32
    %1 = tpu.dynamic_rotate %0 by %c1_i32 dim 0 : vector<8x128xf32>, i32 -> vector<8x128xf32>
    %c0_1 = arith.constant 0 : index
    %c0_2 = arith.constant 0 : index
    %2 = vector.load %arg1[%c0_1, %c0_2] : memref<8x128xf32, #tpu.memory_space<vmem>>, vector<8x128xf32>
    tpu.vector_store %arg1[%c0_1, %c0_2], %1 {strides = array<i32>} : memref<8x128xf32, #tpu.memory_space<vmem>>, vector<8x128xf32>,
    return
  }
}

</mosaic_0001>

<bundles_post_ra>
// kernel: tpu_custom_call.1
= control target key start
LH: loop header
LB: loop body
LE: loop exit
PB: predicated region body
PF: predicated region fallthrough
CT: control target
= control target key end

     0   :  { %6 = vsyncpa [#allocation3], 0  ;;  %s115_s0 = inlined_call_operand.hbm [shape: f32[8,128], index: 0, kind: input, shape index: {}]   ;;  %s116_s1 = inlined_call_operand.hbm [shape: f32[8,128], index: 1, kind: output, shape index: {}]  }
   0x1   :  { %7 = vsyncpa [#allocation4], 0  ;;  %s13_s8 = sshll.u32 %s115_s0, 4  ;;  %s97_s9 = smov [#allocation2]   ;;  %s14_s8 = int_to_ptr.hbm [resolvable:$true] %s13_s8 }
   0x2   :  { %s15_s10 = sshll.u32 %s97_s9, 4  ;;  %s16_s10 = int_to_ptr.vmem [resolvable:$true] %s15_s10 }
   0x3   :  { %18 = dma.hbm_to_vmem [thread:$0]  %s14_s8, 128, %s16_s10, [#allocation3]  }
   0x4   :  { %93 = dma.done.wait [#allocation3], 128  }
   0x5   :  { %94 = vsyncadd [#allocation3], 4294967168  ;;  %s98_s11 = smov [#allocation5]   ;;  %s33_s15 = sshll.u32 %s116_s1, 4  ;;  %v23_v0 = vld [vmem:[#allocation2] sm:$0xff]  ;;  %s34_s15 = int_to_ptr.hbm [resolvable:$true] %s33_s15 }
   0x6   :  { %s31_s12 = sshll.u32 %s98_s11, 4  ;;  %v24_v1 = vrot.slane %v23_v0, 7  ;;  %s32_s12 = int_to_ptr.vmem [resolvable:$true] %s31_s12 }
   0x8   :  { %25 = vst [vmem:[#allocation5] sm:$0xff] %v24_v1 }
   0x9   :  { %36 = dma.vmem_to_hbm [thread:$0]  %s32_s12, 128, %s34_s15, [#allocation4]  }
   0xa   :  { %95 = dma.done.wait [#allocation4], 128  }
   0xb   :  { %96 = vsyncadd [#allocation4], 4294967168 }
   0xc   :  { %41 = vsyncpa [#allocation3], 1 }
   0xd   :  { %42 = vsyncpa [#allocation4], 1 }

</bundles_post_ra>
